<compile_context>
chip_gen: v5e
topology: v5e:2x2
jax: 0.10.0
libtpu: 0.0.40
codegen_flags: <defaults>
</compile_context>

<pallas_src>
import functools

import jax
import jax.numpy as jnp
import numpy as np
from jax.experimental import pallas as pl
from jax.experimental.pallas import tpu as pltpu


def _ms_layer_kernel(x_ref, w_ref, scale_ref, shift_ref, o_ref, xpad_ref,
                     *, k_max, stride):
    """Fused MultiscaleModule layer (all branches) for one batch element.

    x_ref:     (1, L, C_in)               unpadded input, channels last
    w_ref:     (K_max*C_in, C_out)        fused, tap-aligned conv weights (bf16)
    scale_ref: (1, C_out)                 gamma / sqrt(running_var + eps)
    shift_ref: (1, C_out)                 (conv_bias - running_mean) * scale + beta
    o_ref:     (1, L_out, C_out)          strided conv + BN + ReLU output
    xpad_ref:  (L + 2*(K_max//2), C_in)   VMEM scratch holding the padded input
    """
    L = x_ref.shape[1]
    L_out = o_ref.shape[1]
    pad = (xpad_ref.shape[0] - L) // 2

    # In-kernel zero padding (no jnp.pad / extra HBM activation round trip).
    xpad_ref[...] = jnp.zeros_like(xpad_ref)
    xpad_ref[pl.ds(pad, L), :] = x_ref[0]

    # im2col with the conv stride applied in-kernel: tap j contributes the
    # strided sublane slice x_pad[j], x_pad[j+S], ...; concatenating the K_max
    # taps on the lane axis yields a (L_out, K_max*C_in) slab so the whole
    # layer is a single MXU matmul with contraction depth K_max*C_in.
    cols = [xpad_ref[pl.ds(j, L_out, stride), :] for j in range(k_max)]
    slab = jnp.concatenate(cols, axis=-1).astype(jnp.bfloat16)

    acc = jnp.dot(slab, w_ref[...], preferred_element_type=jnp.float32)
    y = acc * scale_ref[...] + shift_ref[...]            # folded BatchNorm
    o_ref[0] = jnp.maximum(y, 0.0).astype(o_ref.dtype)   # ReLU (+ eval Dropout)


def multiscale_module_fwd(x_nlc, layer):
    """One MultiscaleModule: all h Conv1DBlocks fused into a single pallas_call."""
    N, L, C_in = x_nlc.shape
    k_max = layer["k_max"]
    stride = layer["stride"]
    pad = k_max // 2
    L_pad = L + 2 * pad
    L_out = (L + 2 * pad - k_max) // stride + 1
    C_out = layer["w2d"].shape[1]

    # Every branch must produce the same output length (otherwise the PyTorch
    # torch.cat would fail too), and it must match the fused-kernel length.
    for k in layer["kernel_sizes"]:
        assert (L + 2 * (k // 2) - k) // stride + 1 == L_out, (k, L, stride)

    kernel = functools.partial(_ms_layer_kernel, k_max=k_max, stride=stride)
    return pl.pallas_call(
        kernel,
        out_shape=jax.ShapeDtypeStruct((N, L_out, C_out), jnp.float32),
        grid=(N,),
        in_specs=[
            pl.BlockSpec((1, L, C_in), lambda n: (n, 0, 0)),
            pl.BlockSpec((k_max * C_in, C_out), lambda n: (0, 0)),
            pl.BlockSpec((1, C_out), lambda n: (0, 0)),
            pl.BlockSpec((1, C_out), lambda n: (0, 0)),
        ],
        out_specs=pl.BlockSpec((1, L_out, C_out), lambda n: (n, 0, 0)),
        scratch_shapes=[pltpu.VMEM((L_pad, C_in), jnp.float32)],
        compiler_params=pltpu.CompilerParams(
            dimension_semantics=("parallel",),      # batch across v7x's 2 TCs
            vmem_limit_bytes=32 * 1024 * 1024,
        ),
    )(x_nlc, layer["w2d"], layer["scale"], layer["shift"])


def multiscale_branch_fwd(x_ncl, prepared_layers):
    """MultiscaleBranch forward.  Input/output use PyTorch's (N, C, L) layout."""
    x = jnp.transpose(x_ncl, (0, 2, 1))     # NCL -> NLC (channels on lanes)
    for layer in prepared_layers:
        x = multiscale_module_fwd(x, layer)
    return jnp.transpose(x, (0, 2, 1))      # NLC -> NCL


# -------------------- parameter init & one-time constant prep --------------------

def init_conv1d_block_params(key, in_c, out_c, kernel_size):
    kw, kb, kg, kbt, km, kv = jax.random.split(key, 6)
    bound = 1.0 / float(in_c * kernel_size) ** 0.5
    return dict(
        w=jax.random.uniform(kw, (out_c, in_c, kernel_size), jnp.float32,
                             -bound, bound),
        b=jax.random.uniform(kb, (out_c,), jnp.float32, -bound, bound),
        gamma=1.0 + 0.1 * jax.random.normal(kg, (out_c,), jnp.float32),
        beta=0.1 * jax.random.normal(kbt, (out_c,), jnp.float32),
        mean=0.1 * jax.random.normal(km, (out_c,), jnp.float32),
        var=jax.random.uniform(kv, (out_c,), jnp.float32, 0.5, 1.5),
    )


def init_multiscale_branch(key, in_channels, h_s, k_s, c_s, s_s, d_s):
    layers = []
    in_c = in_channels
    for h, k, c, s, d in zip(h_s, k_s, c_s, s_s, d_s):
        branches = []
        for i in range(h):
            key, sub = jax.random.split(key)
            branches.append(
                init_conv1d_block_params(sub, in_c, int(c / h), (2 ** i) * k))
        layers.append(branches)
        in_c = c
    return layers


def prepare_multiscale_branch(raw_layers, strides, eps=1e-5):
    """Fold BN into scale/shift, tap-align branch weights to K_max, fuse on C_out,
    reshape to (K_max*C_in, C_out) and cast to bf16.  Done ONCE at init so the
    forward path contains no constant prep."""
    prepared = []
    for branches, stride in zip(raw_layers, strides):
        kernel_sizes = [p["w"].shape[2] for p in branches]
        k_max = max(kernel_sizes)
        p_max = k_max // 2
        c_in = branches[0]["w"].shape[1]
        w_blocks, scales, shifts = [], [], []
        for prm in branches:
            c_b, _, k_b = prm["w"].shape
            off = p_max - k_b // 2                       # align this scale's taps
            w_t = jnp.transpose(prm["w"], (2, 1, 0))     # (K_b, C_in, C_b)
            w_pad = jnp.zeros((k_max, c_in, c_b), jnp.float32)
            w_pad = w_pad.at[off:off + k_b].set(w_t)
            w_blocks.append(w_pad)
            scale = prm["gamma"] / jnp.sqrt(prm["var"] + eps)
            scales.append(scale)
            shifts.append((prm["b"] - prm["mean"]) * scale + prm["beta"])
        w2d = (jnp.concatenate(w_blocks, axis=-1)
               .reshape(k_max * c_in, -1).astype(jnp.bfloat16))
        prepared.append(dict(
            w2d=w2d,
            scale=jnp.concatenate(scales)[None, :].astype(jnp.float32),
            shift=jnp.concatenate(shifts)[None, :].astype(jnp.float32),
            k_max=k_max, stride=stride, kernel_sizes=kernel_sizes,
        ))
    return prepared


# -------------------- pure-JAX reference (for correctness check) --------------------

def reference_forward(x_ncl, raw_layers, strides, eps=1e-5):
    y = x_ncl
    for branches, stride in zip(raw_layers, strides):
        outs = []
        for prm in branches:
            k = prm["w"].shape[2]
            conv = jax.lax.conv_general_dilated(
                y, prm["w"], window_strides=(stride,),
                padding=[(k // 2, k // 2)],
                dimension_numbers=("NCH", "OIH", "NCH"),
                precision=jax.lax.Precision.HIGHEST)
            conv = conv + prm["b"][None, :, None]
            scale = (prm["gamma"] / jnp.sqrt(prm["var"] + eps))[None, :, None]
            bn = (conv - prm["mean"][None, :, None]) * scale + prm["beta"][None, :, None]
            outs.append(jnp.maximum(bn, 0.0))
        y = jnp.concatenate(outs, axis=1)
    return y


if __name__ == "__main__":
    key = jax.random.PRNGKey(0)

    # Small config consistent with the module: 2 layers, 2 scales each.
    in_channels = 4
    h_s = [2, 2]          # scales per layer -> kernel sizes [4, 8] in each layer
    k_s = [4, 4]          # base kernel sizes
    c_s = [8, 16]         # total output channels per layer
    s_s = [2, 2]          # strides
    d_s = [0.5, 0.5]      # dropout rates (eval-mode identity)

    key, pkey, xkey = jax.random.split(key, 3)
    raw_params = init_multiscale_branch(pkey, in_channels, h_s, k_s, c_s, s_s, d_s)
    prepared = prepare_multiscale_branch(raw_params, s_s)   # hoisted constant prep

    # PyTorch-convention input: (N, C, L)
    x = jax.random.normal(xkey, (2, in_channels, 16), dtype=jnp.float32)

    fwd = jax.jit(lambda inp: multiscale_branch_fwd(inp, prepared))
    y = jax.block_until_ready(fwd(x))

    # Expected: L: 16 -> 9 -> 5, channels: 4 -> 8 -> 16
    assert y.shape == (2, 16, 5), y.shape
    assert bool(jnp.all(jnp.isfinite(y)))

    # Numerical check vs. an f32 XLA reference (kernel matmul runs in bf16).
    y_ref = jax.block_until_ready(reference_forward(x, raw_params, s_s))
    np.testing.assert_allclose(np.asarray(y), np.asarray(y_ref),
                               atol=1e-1, rtol=1e-1)

    print("KERNEL_OK")
</pallas_src>

<mosaic_0001>
module attributes {stable_mosaic.version = 11 : i64} {
  func.func @_ms_layer_kernel(%arg0: i32, %arg1: memref<1x16x4xf32, #tpu.memory_space<vmem>>, %arg2: memref<32x8xbf16, #tpu.memory_space<vmem>>, %arg3: memref<1x8xf32, #tpu.memory_space<vmem>>, %arg4: memref<1x8xf32, #tpu.memory_space<vmem>>, %arg5: memref<1x9x8xf32, #tpu.memory_space<vmem>>, %arg6: memref<24x4xf32, #tpu.memory_space<vmem>>) attributes {dimension_semantics = [#tpu.dimension_semantics<parallel>], iteration_bounds = array<i64: 2>, scalar_prefetch = 0 : i64, scratch_operands = 1 : i64, tpu.core_type = #tpu.core_type<tc>, window_params = [{transform_indices = @transform_0, window_bounds = array<i64: 1, 16, 4>}, {pipeline_mode = #tpu.pipeline_mode<synchronous>, transform_indices = @transform_1, window_bounds = array<i64: 32, 8>}, {pipeline_mode = #tpu.pipeline_mode<synchronous>, transform_indices = @transform_2, window_bounds = array<i64: 1, 8>}, {pipeline_mode = #tpu.pipeline_mode<synchronous>, transform_indices = @transform_3, window_bounds = array<i64: 1, 8>}, {transform_indices = @transform_4, window_bounds = array<i64: 1, 9, 8>}]} {
    %cst = arith.constant 0.000000e+00 : f32
    %0 = vector.broadcast %cst : f32 to vector<24x4xf32>
    %c0 = arith.constant 0 : index
    %c0_0 = arith.constant 0 : index
    %1 = vector.load %arg6[%c0, %c0_0] : memref<24x4xf32, #tpu.memory_space<vmem>>, vector<24x4xf32>
    tpu.vector_store %arg6[%c0, %c0_0], %0 {strides = array<i32>} : memref<24x4xf32, #tpu.memory_space<vmem>>, vector<24x4xf32>,
    %c0_1 = arith.constant 0 : index
    %c0_2 = arith.constant 0 : index
    %c0_3 = arith.constant 0 : index
    %2 = vector.load %arg1[%c0_1, %c0_2, %c0_3] : memref<1x16x4xf32, #tpu.memory_space<vmem>>, vector<1x16x4xf32>
    %3 = vector.shape_cast %2 : vector<1x16x4xf32> to vector<16x4xf32>
    %c4 = arith.constant 4 : index
    %c0_4 = arith.constant 0 : index
    %4 = vector.load %arg6[%c4, %c0_4] : memref<24x4xf32, #tpu.memory_space<vmem>>, vector<16x4xf32>
    tpu.vector_store %arg6[%c4, %c0_4], %3 {strides = array<i32>} : memref<24x4xf32, #tpu.memory_space<vmem>>, vector<16x4xf32>,
    %c0_5 = arith.constant 0 : index
    %c0_6 = arith.constant 0 : index
    %5 = tpu.strided_load %arg6[%c0_5, %c0_6] {strides = array<i32: 2, 1>} : memref<24x4xf32, #tpu.memory_space<vmem>>, vector<9x4xf32>
    %c1 = arith.constant 1 : index
    %c0_7 = arith.constant 0 : index
    %6 = tpu.strided_load %arg6[%c1, %c0_7] {strides = array<i32: 2, 1>} : memref<24x4xf32, #tpu.memory_space<vmem>>, vector<9x4xf32>
    %c2 = arith.constant 2 : index
    %c0_8 = arith.constant 0 : index
    %7 = tpu.strided_load %arg6[%c2, %c0_8] {strides = array<i32: 2, 1>} : memref<24x4xf32, #tpu.memory_space<vmem>>, vector<9x4xf32>
    %c3 = arith.constant 3 : index
    %c0_9 = arith.constant 0 : index
    %8 = tpu.strided_load %arg6[%c3, %c0_9] {strides = array<i32: 2, 1>} : memref<24x4xf32, #tpu.memory_space<vmem>>, vector<9x4xf32>
    %c4_10 = arith.constant 4 : index
    %c0_11 = arith.constant 0 : index
    %9 = tpu.strided_load %arg6[%c4_10, %c0_11] {strides = array<i32: 2, 1>} : memref<24x4xf32, #tpu.memory_space<vmem>>, vector<9x4xf32>
    %c5 = arith.constant 5 : index
    %c0_12 = arith.constant 0 : index
    %10 = tpu.strided_load %arg6[%c5, %c0_12] {strides = array<i32: 2, 1>} : memref<24x4xf32, #tpu.memory_space<vmem>>, vector<9x4xf32>
    %c6 = arith.constant 6 : index
    %c0_13 = arith.constant 0 : index
    %11 = tpu.strided_load %arg6[%c6, %c0_13] {strides = array<i32: 2, 1>} : memref<24x4xf32, #tpu.memory_space<vmem>>, vector<9x4xf32>
    %c7 = arith.constant 7 : index
    %c0_14 = arith.constant 0 : index
    %12 = tpu.strided_load %arg6[%c7, %c0_14] {strides = array<i32: 2, 1>} : memref<24x4xf32, #tpu.memory_space<vmem>>, vector<9x4xf32>
    %13 = tpu.concatenate %5, %6, %7, %8, %9, %10, %11, %12 in 1 : vector<9x4xf32>, vector<9x4xf32>, vector<9x4xf32>, vector<9x4xf32>, vector<9x4xf32>, vector<9x4xf32>, vector<9x4xf32>, vector<9x4xf32> -> vector<9x32xf32>
    %14 = arith.truncf %13 : vector<9x32xf32> to vector<9x32xbf16>
    %c0_15 = arith.constant 0 : index
    %c0_16 = arith.constant 0 : index
    %15 = vector.load %arg2[%c0_15, %c0_16] : memref<32x8xbf16, #tpu.memory_space<vmem>>, vector<32x8xbf16>
    %cst_17 = arith.constant dense<0.000000e+00> : vector<9x8xf32>
    %16 = tpu.matmul %14, %15, %cst_17 {dimension_numbers = #tpu.dot_dimension_numbers<[1], [0], [0], [1], [0, 0, 1, 1], [], []>} : vector<9x32xbf16>, vector<32x8xbf16>, vector<9x8xf32> -> vector<9x8xf32>
    %c0_18 = arith.constant 0 : index
    %c0_19 = arith.constant 0 : index
    %17 = vector.load %arg3[%c0_18, %c0_19] : memref<1x8xf32, #tpu.memory_space<vmem>>, vector<1x8xf32>
    %18 = vector.broadcast %17 : vector<1x8xf32> to vector<9x8xf32>
    %19 = arith.mulf %16, %18 : vector<9x8xf32>
    %c0_20 = arith.constant 0 : index
    %c0_21 = arith.constant 0 : index
    %20 = vector.load %arg4[%c0_20, %c0_21] : memref<1x8xf32, #tpu.memory_space<vmem>>, vector<1x8xf32>
    %21 = vector.broadcast %20 : vector<1x8xf32> to vector<9x8xf32>
    %22 = arith.addf %19, %21 : vector<9x8xf32>
    %cst_22 = arith.constant 0.000000e+00 : f32
    %23 = vector.broadcast %cst_22 : f32 to vector<9x8xf32>
    %24 = arith.maximumf %22, %23 : vector<9x8xf32>
    %c0_23 = arith.constant 0 : index
    %c0_24 = arith.constant 0 : index
    %c0_25 = arith.constant 0 : index
    %25 = vector.load %arg5[%c0_23, %c0_24, %c0_25] : memref<1x9x8xf32, #tpu.memory_space<vmem>>, vector<1x9x8xf32>
    %26 = vector.shape_cast %25 : vector<1x9x8xf32> to vector<9x8xf32>
    %27 = vector.shape_cast %24 : vector<9x8xf32> to vector<1x9x8xf32>
    tpu.vector_store %arg5[%c0_23, %c0_24, %c0_25], %27 {strides = array<i32>} : memref<1x9x8xf32, #tpu.memory_space<vmem>>, vector<1x9x8xf32>,
    return
  }
  func.func @transform_0(%arg0: i32) -> (i32, i32, i32) {
    %c0_i32 = arith.constant 0 : i32
    %c0_i32_0 = arith.constant 0 : i32
    %c0_i32_1 = arith.constant 0 : i32
    return %arg0, %c0_i32, %c0_i32_0 : i32, i32, i32
  }
  func.func @transform_1(%arg0: i32) -> (i32, i32) {
    %c0_i32 = arith.constant 0 : i32
    %c0_i32_0 = arith.constant 0 : i32
    %c0_i32_1 = arith.constant 0 : i32
    return %c0_i32, %c0_i32_0 : i32, i32
  }
  func.func @transform_2(%arg0: i32) -> (i32, i32) {
    %c0_i32 = arith.constant 0 : i32
    %c0_i32_0 = arith.constant 0 : i32
    %c0_i32_1 = arith.constant 0 : i32
    return %c0_i32, %c0_i32_0 : i32, i32
  }
  func.func @transform_3(%arg0: i32) -> (i32, i32) {
    %c0_i32 = arith.constant 0 : i32
    %c0_i32_0 = arith.constant 0 : i32
    %c0_i32_1 = arith.constant 0 : i32
    return %c0_i32, %c0_i32_0 : i32, i32
  }
  func.func @transform_4(%arg0: i32) -> (i32, i32, i32) {
    %c0_i32 = arith.constant 0 : i32
    %c0_i32_0 = arith.constant 0 : i32
    %c0_i32_1 = arith.constant 0 : i32
    return %arg0, %c0_i32, %c0_i32_0 : i32, i32, i32
  }
}

module attributes {stable_mosaic.version = 11 : i64} {
  func.func @_ms_layer_kernel(%arg0: i32, %arg1: memref<1x9x8xf32, #tpu.memory_space<vmem>>, %arg2: memref<64x16xbf16, #tpu.memory_space<vmem>>, %arg3: memref<1x16xf32, #tpu.memory_space<vmem>>, %arg4: memref<1x16xf32, #tpu.memory_space<vmem>>, %arg5: memref<1x5x16xf32, #tpu.memory_space<vmem>>, %arg6: memref<17x8xf32, #tpu.memory_space<vmem>>) attributes {dimension_semantics = [#tpu.dimension_semantics<parallel>], iteration_bounds = array<i64: 2>, scalar_prefetch = 0 : i64, scratch_operands = 1 : i64, tpu.core_type = #tpu.core_type<tc>, window_params = [{transform_indices = @transform_0, window_bounds = array<i64: 1, 9, 8>}, {pipeline_mode = #tpu.pipeline_mode<synchronous>, transform_indices = @transform_1, window_bounds = array<i64: 64, 16>}, {pipeline_mode = #tpu.pipeline_mode<synchronous>, transform_indices = @transform_2, window_bounds = array<i64: 1, 16>}, {pipeline_mode = #tpu.pipeline_mode<synchronous>, transform_indices = @transform_3, window_bounds = array<i64: 1, 16>}, {transform_indices = @transform_4, window_bounds = array<i64: 1, 5, 16>}]} {
    %cst = arith.constant 0.000000e+00 : f32
    %0 = vector.broadcast %cst : f32 to vector<17x8xf32>
    %c0 = arith.constant 0 : index
    %c0_0 = arith.constant 0 : index
    %1 = vector.load %arg6[%c0, %c0_0] : memref<17x8xf32, #tpu.memory_space<vmem>>, vector<17x8xf32>
    tpu.vector_store %arg6[%c0, %c0_0], %0 {strides = array<i32>} : memref<17x8xf32, #tpu.memory_space<vmem>>, vector<17x8xf32>,
    %c0_1 = arith.constant 0 : index
    %c0_2 = arith.constant 0 : index
    %c0_3 = arith.constant 0 : index
    %2 = vector.load %arg1[%c0_1, %c0_2, %c0_3] : memref<1x9x8xf32, #tpu.memory_space<vmem>>, vector<1x9x8xf32>
    %3 = vector.shape_cast %2 : vector<1x9x8xf32> to vector<9x8xf32>
    %c4 = arith.constant 4 : index
    %c0_4 = arith.constant 0 : index
    %4 = vector.load %arg6[%c4, %c0_4] : memref<17x8xf32, #tpu.memory_space<vmem>>, vector<9x8xf32>
    tpu.vector_store %arg6[%c4, %c0_4], %3 {strides = array<i32>} : memref<17x8xf32, #tpu.memory_space<vmem>>, vector<9x8xf32>,
    %c0_5 = arith.constant 0 : index
    %c0_6 = arith.constant 0 : index
    %5 = tpu.strided_load %arg6[%c0_5, %c0_6] {strides = array<i32: 2, 1>} : memref<17x8xf32, #tpu.memory_space<vmem>>, vector<5x8xf32>
    %c1 = arith.constant 1 : index
    %c0_7 = arith.constant 0 : index
    %6 = tpu.strided_load %arg6[%c1, %c0_7] {strides = array<i32: 2, 1>} : memref<17x8xf32, #tpu.memory_space<vmem>>, vector<5x8xf32>
    %c2 = arith.constant 2 : index
    %c0_8 = arith.constant 0 : index
    %7 = tpu.strided_load %arg6[%c2, %c0_8] {strides = array<i32: 2, 1>} : memref<17x8xf32, #tpu.memory_space<vmem>>, vector<5x8xf32>
    %c3 = arith.constant 3 : index
    %c0_9 = arith.constant 0 : index
    %8 = tpu.strided_load %arg6[%c3, %c0_9] {strides = array<i32: 2, 1>} : memref<17x8xf32, #tpu.memory_space<vmem>>, vector<5x8xf32>
    %c4_10 = arith.constant 4 : index
    %c0_11 = arith.constant 0 : index
    %9 = tpu.strided_load %arg6[%c4_10, %c0_11] {strides = array<i32: 2, 1>} : memref<17x8xf32, #tpu.memory_space<vmem>>, vector<5x8xf32>
    %c5 = arith.constant 5 : index
    %c0_12 = arith.constant 0 : index
    %10 = tpu.strided_load %arg6[%c5, %c0_12] {strides = array<i32: 2, 1>} : memref<17x8xf32, #tpu.memory_space<vmem>>, vector<5x8xf32>
    %c6 = arith.constant 6 : index
    %c0_13 = arith.constant 0 : index
    %11 = tpu.strided_load %arg6[%c6, %c0_13] {strides = array<i32: 2, 1>} : memref<17x8xf32, #tpu.memory_space<vmem>>, vector<5x8xf32>
    %c7 = arith.constant 7 : index
    %c0_14 = arith.constant 0 : index
    %12 = tpu.strided_load %arg6[%c7, %c0_14] {strides = array<i32: 2, 1>} : memref<17x8xf32, #tpu.memory_space<vmem>>, vector<5x8xf32>
    %13 = tpu.concatenate %5, %6, %7, %8, %9, %10, %11, %12 in 1 : vector<5x8xf32>, vector<5x8xf32>, vector<5x8xf32>, vector<5x8xf32>, vector<5x8xf32>, vector<5x8xf32>, vector<5x8xf32>, vector<5x8xf32> -> vector<5x64xf32>
    %14 = arith.truncf %13 : vector<5x64xf32> to vector<5x64xbf16>
    %c0_15 = arith.constant 0 : index
    %c0_16 = arith.constant 0 : index
    %15 = vector.load %arg2[%c0_15, %c0_16] : memref<64x16xbf16, #tpu.memory_space<vmem>>, vector<64x16xbf16>
    %cst_17 = arith.constant dense<0.000000e+00> : vector<5x16xf32>
    %16 = tpu.matmul %14, %15, %cst_17 {dimension_numbers = #tpu.dot_dimension_numbers<[1], [0], [0], [1], [0, 0, 1, 1], [], []>} : vector<5x64xbf16>, vector<64x16xbf16>, vector<5x16xf32> -> vector<5x16xf32>
    %c0_18 = arith.constant 0 : index
    %c0_19 = arith.constant 0 : index
    %17 = vector.load %arg3[%c0_18, %c0_19] : memref<1x16xf32, #tpu.memory_space<vmem>>, vector<1x16xf32>
    %18 = vector.broadcast %17 : vector<1x16xf32> to vector<5x16xf32>
    %19 = arith.mulf %16, %18 : vector<5x16xf32>
    %c0_20 = arith.constant 0 : index
    %c0_21 = arith.constant 0 : index
    %20 = vector.load %arg4[%c0_20, %c0_21] : memref<1x16xf32, #tpu.memory_space<vmem>>, vector<1x16xf32>
    %21 = vector.broadcast %20 : vector<1x16xf32> to vector<5x16xf32>
    %22 = arith.addf %19, %21 : vector<5x16xf32>
    %cst_22 = arith.constant 0.000000e+00 : f32
    %23 = vector.broadcast %cst_22 : f32 to vector<5x16xf32>
    %24 = arith.maximumf %22, %23 : vector<5x16xf32>
    %c0_23 = arith.constant 0 : index
    %c0_24 = arith.constant 0 : index
    %c0_25 = arith.constant 0 : index
    %25 = vector.load %arg5[%c0_23, %c0_24, %c0_25] : memref<1x5x16xf32, #tpu.memory_space<vmem>>, vector<1x5x16xf32>
    %26 = vector.shape_cast %25 : vector<1x5x16xf32> to vector<5x16xf32>
    %27 = vector.shape_cast %24 : vector<5x16xf32> to vector<1x5x16xf32>
    tpu.vector_store %arg5[%c0_23, %c0_24, %c0_25], %27 {strides = array<i32>} : memref<1x5x16xf32, #tpu.memory_space<vmem>>, vector<1x5x16xf32>,
    return
  }
  func.func @transform_0(%arg0: i32) -> (i32, i32, i32) {
    %c0_i32 = arith.constant 0 : i32
    %c0_i32_0 = arith.constant 0 : i32
    %c0_i32_1 = arith.constant 0 : i32
    return %arg0, %c0_i32, %c0_i32_0 : i32, i32, i32
  }
  func.func @transform_1(%arg0: i32) -> (i32, i32) {
    %c0_i32 = arith.constant 0 : i32
    %c0_i32_0 = arith.constant 0 : i32
    %c0_i32_1 = arith.constant 0 : i32
    return %c0_i32, %c0_i32_0 : i32, i32
  }
  func.func @transform_2(%arg0: i32) -> (i32, i32) {
    %c0_i32 = arith.constant 0 : i32
    %c0_i32_0 = arith.constant 0 : i32
    %c0_i32_1 = arith.constant 0 : i32
    return %c0_i32, %c0_i32_0 : i32, i32
  }
  func.func @transform_3(%arg0: i32) -> (i32, i32) {
    %c0_i32 = arith.constant 0 : i32
    %c0_i32_0 = arith.constant 0 : i32
    %c0_i32_1 = arith.constant 0 : i32
    return %c0_i32, %c0_i32_0 : i32, i32
  }
  func.func @transform_4(%arg0: i32) -> (i32, i32, i32) {
    %c0_i32 = arith.constant 0 : i32
    %c0_i32_0 = arith.constant 0 : i32
    %c0_i32_1 = arith.constant 0 : i32
    return %arg0, %c0_i32, %c0_i32_0 : i32, i32, i32
  }
}

</mosaic_0001>

<bundles_post_ra>
// kernel: _lambda_.3
= control target key start
LH: loop header
LB: loop body
LE: loop exit
PB: predicated region body
PF: predicated region fallthrough
CT: control target
= control target key end

     0   :  { %s469_s15 = smov 0   ;;  %s512_s0 = inlined_call_operand.vmem [shape: f32[2,9,8], index: 0, kind: input, shape index: {}]   ;;  %s513_s1 = inlined_call_operand.vmem [shape: bf16[64,16], index: 1, kind: input, shape index: {}]   ;;  %s514_s2 = inlined_call_operand.vmem [shape: f32[1,16], index: 2, kind: input, shape index: {}]   ;;  %s515_s3 = inlined_call_operand.vmem [shape: f32[1,16], index: 3, kind: input, shape index: {}]   ;;  %s516_s4 = inlined_call_operand.vmem [shape: f32[2,5,16], index: 4, kind: output, shape index: {}]  }
   0x1 LB: > { %s378_s16 = sadd.s32 4294967295, %s434_s15   ;;  %p382_p0 = scmp.ge.s32.totalorder %s434_s15, 1  ;;  %s434_s15 = sphi %s469_s15, %s14_s15  }
   0x2   : > { %p162_p1 = scmp.lt.s32.totalorder %s434_s15, 3 }
   0x4   : > { %p163_p2 = pnand %p382_p0, %p162_p1 }
   0x5   : > { %p187_p3 = scmp.lt.s32.totalorder (!%p163_p2), %s378_s16, 1  ;;  %s437_s21 = smov (!%p163_p2), 8  }
   0x6   : > { %166 = sbr.rel (%p163_p2) target bundleno = 291 (0x123), region = 36  ;;  %s438_s22 = smov (!%p163_p2), 24  }
   0x7   : > { %s439_s23 = smov (!%p163_p2), 40   ;;  %s440_s24 = smov (!%p163_p2), 16  }
   0x8   : > { %s441_s25 = smov (!%p163_p2), 32   ;;  %s442_s26 = smov (!%p163_p2), 48  }
   0x9   : > { %s443_s27 = smov (!%p163_p2), 56  }
   0xb   : > { %vm197_vm0 = vcmask 64512   ;;  %v436_v0 = vmov 0.0   ;;  %s518_s16 = smov (!%p187_p3, %s378_s16), 1  ;;  %vm200_vm1 = vcmask 57344   ;;  %v409_v10 = vld [vmem:[%s513_s1 + $0x18] sm:$0xff]  ;;  %v408_v11 = vld [vmem:[%s513_s1 + $0x10] sm:$0xff] }
   0xc   : > { %198 = vst.msk [vmem:[#allocation2] sm:$0xff] %vm197_vm0, %v436_v0  ;;  %s405_s17 = sshll.u32 %s518_s16, 4  ;;  %303 = vmatpush.bf16.msra.mxu0 %v409_v10  ;;  %v407_v12 = vld [vmem:[%s513_s1 + $0x8] sm:$0xff]  ;;  %v406_v13 = vld [vmem:[%s513_s1] sm:$0xff]  ;;  %vm250_vm2 = vcmask 130048   ;;  %vm252_vm3 = vcmask 195584  }
   0xd   : > { %199 = vst.msk [vmem:[#allocation2 + $0x8] sm:$0xff] %vm197_vm0, %v436_v0  ;;  %s191_s20 = scalar_lea.vmem %s512_s0, %s405_s17  ;;  %vm254_vm4 = vcmask 261120   ;;  %vm256_vm5 = vcmask 326656   ;;  %vm258_vm6 = vcmask 392192   ;;  %vm260_vm7 = vcmask 457728   ;;  %s385_s14 = sshll.u32 %s518_s16, 3 }
   0xe   : > { %v202_v1 = vld [vmem:[%s191_s20] sm:$0xff]  ;;  %v203_v2 = vld [vmem:[%s191_s20 + $0x8] sm:$0x1]  ;;  %vm295_vm8 = vcmask 523264   ;;  %s195_s19 = scalar_lea.vmem %s516_s4, %s385_s14  ;;  %vm323_vm9 = vcmask 126976  }
   0xf   : > { %204 = vst.msk [vmem:[#allocation2 + $0x4] sm:$0xff] %vm197_vm0, %v202_v1  ;;  %v426_v30 = vld [vmem:[%s514_s2] ss:$0 sm:$0xff] }
  0x10   : > { %205 = vst.msk [vmem:[#allocation2 + $0xc] sm:$0x1] %vm200_vm1, %v203_v2  ;;  %304 = vmatpush.bf16.msra.mxu0 %v408_v11  ;;  %v427_v31 = vld [vmem:[%s515_s3] ss:$0 sm:$0xff] }
  0x14   : > { %305 = vmatpush.bf16.msra.mxu0 %v407_v12 }
  0x16   : > { %v208_v3 = vld [vmem:[#allocation2 + $0x1] ss:$2 sm:$0x1f]  ;;  %v210_v6 = vld [vmem:[#allocation2 + $0x2] ss:$2 sm:$0x1f] }
  0x17   : > { %v212_v4 = vld [vmem:[#allocation2 + $0x3] ss:$2 sm:$0x1f]  ;;  %222 = vrot.lane.b32.xlu0 %v208_v3, %s437_s21  ;;  %v214_v7 = vld [vmem:[#allocation2 + $0x4] ss:$2 sm:$0x1f] }
  0x18   : > { %230 = vrot.lane.b32.xlu1 %v212_v4, %s438_s22  ;;  %v216_v5 = vld [vmem:[#allocation2 + $0x5] ss:$2 sm:$0x1f]  ;;  %v218_v8 = vld [vmem:[#allocation2 + $0x6] ss:$2 sm:$0x1f]  ;;  %306 = vmatpush.bf16.msra.mxu0 %v406_v13 }
  0x19   : > { %238 = vrot.lane.b32.xlu2 %v216_v5, %s439_s23  ;;  %v220_v9 = vld [vmem:[#allocation2 + $0x7] ss:$2 sm:$0x1f]  ;;  %v206_v17 = vld [vmem:[#allocation2] ss:$2 sm:$0x1f] }
  0x1f   : > { %226 = vrot.lane.b32.xlu0 %v210_v6, %s440_s24 }
  0x20   : > { %234 = vrot.lane.b32.xlu1 %v214_v7, %s441_s25 }
  0x21   : > { %242 = vrot.lane.b32.xlu2 %v218_v8, %s442_s26 }
  0x27   : > { %246 = vrot.lane.b32.xlu0 %v220_v9, %s443_s27 }
  0x73   : > { %v239_v16 = vpop.permute.xlu2 %238 }
  0x7b   : > { %v243_v24 = vpop.permute.xlu2 %242 }
  0x89   : > { %v223_v14 = vpop.permute.xlu0 %222 }
  0x8a   : > { %v231_v15 = vpop.permute.xlu1 %230  ;;  %v249_v18 = vsel %vm197_vm0, %v206_v17, %v223_v14 }
  0x91   : > { %v227_v19 = vpop.permute.xlu0 %226 }
  0x92   : > { %v235_v20 = vpop.permute.xlu1 %234  ;;  %v251_v21 = vsel %vm250_vm2, %v249_v18, %v227_v19 }
  0x93   : > { %v253_v22 = vsel %vm252_vm3, %v251_v21, %v231_v15 }
  0x94   : > { %v255_v23 = vsel %vm254_vm4, %v253_v22, %v235_v20 }
  0x95   : > { %v257_v25 = vsel %vm256_vm5, %v255_v23, %v239_v16 }
  0x96   : > { %v259_v26 = vsel %vm258_vm6, %v257_v25, %v243_v24 }
  0x99   : > { %v247_v27 = vpop.permute.xlu0 %246 }
  0x9a   : > { %v261_v28 = vsel %vm260_vm7, %v259_v26, %v247_v27 }
  0x9b   : > { %v262_v29 = vpack.c.bf16 %v261_v28, %v261_v28 }
  0x9d   : > { %402 = vmatmul.msk.bf16.vlgmr.msra.gmra.mxu0 %vm295_vm8, %v262_v29 }
 0x11a   : > { %v308_v32 = vpop.f32.mrf.mxu0 }
 0x11b   : > { %v316_v33 = vmul.f32 %v426_v30, %v308_v32 }
 0x11d   : > { %v321_v34 = vadd.f32 %v427_v31, %v316_v33 }
 0x11f   : > { %v322_v35 = vmax.f32 %v321_v34, 0.0 }
 0x121   : > { %324 = vst.msk [vmem:[%s195_s19] sm:$0x1f] %vm323_vm9, %v322_v35 }
 0x122   : > { %v310_v36 = vpop.f32.mrf.mxu0 }
 0x123 PF: > { %s14_s15 = sadd.s32 1, %s434_s15  }
 0x124   : > { %p11_p4 = scmp.ge.s32.totalorder %s14_s15, 4  }
 0x126   :  { %13 = sbr.rel (!%p11_p4) target bundleno = 1 (0x1), region = 73 }

// kernel: _lambda_.2
= control target key start
LH: loop header
LB: loop body
LE: loop exit
PB: predicated region body
PF: predicated region fallthrough
CT: control target
= control target key end

     0   :  { %9 = vsyncpa [#allocation4], 0  ;;  %s620_s15 = smov 0   ;;  %s665_s0 = inlined_call_operand.vmem [shape: f32[2,16,4], index: 0, kind: input, shape index: {}]   ;;  %s666_s1 = inlined_call_operand.hbm [shape: bf16[32,8], index: 1, kind: input, shape index: {}]   ;;  %s667_s2 = inlined_call_operand.vmem [shape: f32[1,8], index: 2, kind: input, shape index: {}]   ;;  %s668_s3 = inlined_call_operand.vmem [shape: f32[1,8], index: 3, kind: input, shape index: {}]   ;;  %s669_s4 = inlined_call_operand.vmem [shape: f32[2,9,8], index: 4, kind: output, shape index: {}]  }
   0x1 LB: > { %s146_s18 = sshll.u32 %s666_s1, 4  ;;  %s450_s19 = sadd.s32 4294967295, %s582_s15   ;;  %s582_s15 = sphi %s620_s15, %s15_s15   ;;  %s147_s18 = int_to_ptr.hbm [resolvable:$true] %s146_s18 }
   0x2   : > { %p452_p0 = scmp.ge.s32.totalorder %s582_s15, 1  ;;  %p135_p1 = scmp.lt.s32.totalorder %s582_s15, 3 }
   0x3   : > { %p484_p2 = scmp.eq.s32.totalorder %s450_s19, 0  ;;  %s584_s20 = smov [#allocation3]  }
   0x4   : > { %p136_p3 = pnand %p452_p0, %p135_p1  ;;  %s148_s21 = sshll.u32 %s584_s20, 4  ;;  %s149_s21 = int_to_ptr.vmem [resolvable:$true] %s148_s21 }
   0x5   : > { %s585_s22 = smov 64   ;;  %s586_s23 = smov 4  }
   0x6   : > { %p480_p4 = pneg %p136_p3  ;;  %178 = sbr.rel (%p136_p3) target bundleno = 306 (0x132), region = 36 }
   0x8   : > { %p481_p5 = pnand %p484_p2, %p480_p4 }
   0xa   : > { %483 = dma.hbm_to_vmem [thread:$0]  (!%p481_p5), %s147_s18, 256, %s149_s21, [#allocation4], %s585_s22, %s585_s22, %s586_s23  }
   0xb   : > { %577 = dma.done.wait (%p484_p2), [#allocation4], 256  }
   0xc   : > { %579 = vsyncadd (%p484_p2), [#allocation4], 4294967040  ;;  %p205_p6 = scmp.lt.s32.totalorder %s450_s19, 1  ;;  %vm216_vm0 = vcmask 31744   ;;  %v587_v0 = vmov 0.0   ;;  %s588_s28 = smov 4  }
   0xd   : > { %217 = vst.msk [vmem:[#allocation2] sm:$0xff] %vm216_vm0, %v587_v0  ;;  %s589_s29 = smov 12   ;;  %s590_s30 = smov 20   ;;  %v475_v24 = vld [vmem:[#allocation3 + $0x8] sm:$0xff]  ;;  %v474_v25 = vld [vmem:[#allocation3] sm:$0xff]  ;;  %vm313_vm1 = vcmask 64512  }
   0xe   : > { %s671_s19 = smov (!%p205_p6, %s450_s19), 1  ;;  %218 = vst.msk [vmem:[#allocation2 + $0x8] sm:$0xff] %vm216_vm0, %v587_v0  ;;  %s591_s5 = smov 8   ;;  %358 = vmatpush.bf16.msra.mxu0 %v475_v24  ;;  %vm316_vm2 = vcmask 97280   ;;  %vm319_vm3 = vcmask 130048   ;;  %vm322_vm4 = vcmask 162816  }
   0xf   : > { %219 = vst.msk [vmem:[#allocation2 + $0x10] sm:$0xff] %vm216_vm0, %v587_v0  ;;  %s472_s24 = sshll.u32 %s671_s19, 4  ;;  %s592_s6 = smov 16   ;;  %vm325_vm5 = vcmask 195584   ;;  %vm328_vm6 = vcmask 228352   ;;  %vm348_vm7 = vcmask 261120  }
  0x10   : > { %s209_s27 = scalar_lea.vmem %s665_s0, %s472_s24  ;;  %s593_s7 = smov 24   ;;  %v540_v0 = vld [vmem:[%s667_s2] ss:$0 sm:$0xff]  ;;  %vm381_vm8 = vcmask 57344  }
  0x11   : > { %v220_v1 = vld [vmem:[%s209_s27] sm:$0xff]  ;;  %v221_v2 = vld [vmem:[%s209_s27 + $0x8] sm:$0xff]  ;;  %s594_s8 = smov 28   ;;  %s214_s16 = scalar_lea.vmem %s669_s4, %s472_s24 }
  0x12   : > { %222 = vst.msk [vmem:[#allocation2 + $0x4] sm:$0xff] %vm216_vm0, %v220_v1  ;;  %359 = vmatpush.bf16.msra.mxu0 %v474_v25  ;;  %v541_v1 = vld [vmem:[%s668_s3] ss:$0 sm:$0xff] }
  0x13   : > { %223 = vst.msk [vmem:[#allocation2 + $0xc] sm:$0xff] %vm216_vm0, %v221_v2 }
  0x16   : > { %v246_v3 = vld [vmem:[#allocation2 + $0x15] ss:$2 sm:$0x1]  ;;  %v242_v15 = vld [vmem:[#allocation2 + $0x14] ss:$2 sm:$0x1] }
  0x17   : > { %v250_v18 = vld [vmem:[#allocation2 + $0x16] ss:$2 sm:$0x1]  ;;  %v254_v22 = vld [vmem:[#allocation2 + $0x17] ss:$2 sm:$0x1] }
  0x1a   : > { %v228_v4 = vld [vmem:[#allocation2 + $0x1] ss:$2 sm:$0xff]  ;;  %v230_v5 = vld [vmem:[#allocation2 + $0x11] ss:$2 sm:$0x1] }
  0x1b   : > { %v505_v6 = vpack.i.bf16 %v230_v5, %v228_v4  ;;  %v236_v7 = vld [vmem:[#allocation2 + $0x3] ss:$2 sm:$0xff]  ;;  %v238_v8 = vld [vmem:[#allocation2 + $0x13] ss:$2 sm:$0x1] }
  0x1c   : > { %v515_v9 = vpack.i.bf16 %v238_v8, %v236_v7  ;;  %v244_v10 = vld [vmem:[#allocation2 + $0x5] ss:$2 sm:$0xff]  ;;  %v232_v11 = vld [vmem:[#allocation2 + $0x2] ss:$2 sm:$0xff] }
  0x1d   : > { %506 = vrot.lane.b32.xlu0 %v505_v6, %s588_s28  ;;  %v234_v12 = vld [vmem:[#allocation2 + $0x12] ss:$2 sm:$0x1]  ;;  %v525_v13 = vpack.i.bf16 %v246_v3, %v244_v10  ;;  %v252_v21 = vld [vmem:[#allocation2 + $0x7] ss:$2 sm:$0xff] }
  0x1e   : > { %516 = vrot.lane.b32.xlu1 %v515_v9, %s589_s29  ;;  %v240_v14 = vld [vmem:[#allocation2 + $0x4] ss:$2 sm:$0xff]  ;;  %v510_v16 = vpack.i.bf16 %v234_v12, %v232_v11  ;;  %v535_v23 = vpack.i.bf16 %v254_v22, %v252_v21 }
  0x1f   : > { %526 = vrot.lane.b32.xlu2 %v525_v13, %s590_s30  ;;  %v248_v17 = vld [vmem:[#allocation2 + $0x6] ss:$2 sm:$0xff]  ;;  %v520_v19 = vpack.i.bf16 %v242_v15, %v240_v14 }
  0x20   : > { %v530_v20 = vpack.i.bf16 %v250_v18, %v248_v17  ;;  %v226_v31 = vld [vmem:[#allocation2 + $0x10] ss:$2 sm:$0x1]  ;;  %v224_v32 = vld [vmem:[#allocation2] ss:$2 sm:$0xff] }
  0x25   : > { %511 = vrot.lane.b32.xlu0 %v510_v16, %s591_s5 }
  0x26   : > { %521 = vrot.lane.b32.xlu1 %v520_v19, %s592_s6 }
  0x27   : > { %531 = vrot.lane.b32.xlu2 %v530_v20, %s593_s7 }
  0x2d   : > { %536 = vrot.lane.b32.xlu0 %v535_v23, %s594_s8 }
  0x79   : > { %v527_v28 = vpop.permute.xlu2 %526 }
  0x7a   : > { %v529_v48 = vunpack.i.h.bf16 %v527_v28  ;;  %v528_v49 = vunpack.i.l.bf16 %v527_v28 }
  0x81   : > { %v532_v45 = vpop.permute.xlu2 %531 }
  0x82   : > { %v534_v52 = vunpack.i.h.bf16 %v532_v45  ;;  %v533_v53 = vunpack.i.l.bf16 %v532_v45 }
  0x8f   : > { %v507_v26 = vpop.permute.xlu0 %506 }
  0x90   : > { %v517_v27 = vpop.permute.xlu1 %516  ;;  %v509_v29 = vunpack.i.h.bf16 %v507_v26  ;;  %v508_v30 = vunpack.i.l.bf16 %v507_v26 }
  0x91   : > { %v519_v34 = vunpack.i.h.bf16 %v517_v27  ;;  %v518_v35 = vunpack.i.l.bf16 %v517_v27 }
  0x92   : > { %v312_v39 = vsel %vm216_vm0, %v226_v31, %v509_v29  ;;  %v311_v40 = vsel %vm216_vm0, %v224_v32, %v508_v30 }
  0x97   : > { %v512_v33 = vpop.permute.xlu0 %511 }
  0x98   : > { %v514_v36 = vunpack.i.h.bf16 %v512_v33  ;;  %v513_v37 = vunpack.i.l.bf16 %v512_v33  ;;  %v522_v38 = vpop.permute.xlu1 %521 }
  0x99   : > { %v524_v41 = vunpack.i.h.bf16 %v522_v38  ;;  %v523_v42 = vunpack.i.l.bf16 %v522_v38 }
  0x9a   : > { %v314_v43 = vsel %vm313_vm1, %v311_v40, %v513_v37  ;;  %v315_v44 = vsel %vm313_vm1, %v312_v39, %v514_v36 }
  0x9b   : > { %v317_v46 = vsel %vm316_vm2, %v314_v43, %v518_v35  ;;  %v318_v47 = vsel %vm316_vm2, %v315_v44, %v519_v34 }
  0x9c   : > { %v320_v50 = vsel %vm319_vm3, %v317_v46, %v523_v42  ;;  %v321_v51 = vsel %vm319_vm3, %v318_v47, %v524_v41 }
  0x9d   : > { %v323_v54 = vsel %vm322_vm4, %v320_v50, %v528_v49  ;;  %v324_v55 = vsel %vm322_vm4, %v321_v51, %v529_v48 }
  0x9e   : > { %v326_v59 = vsel %vm325_vm5, %v323_v54, %v533_v53  ;;  %v327_v60 = vsel %vm325_vm5, %v324_v55, %v534_v52 }
  0x9f   : > { %v537_v56 = vpop.permute.xlu0 %536 }
  0xa0   : > { %v539_v57 = vunpack.i.h.bf16 %v537_v56  ;;  %v538_v58 = vunpack.i.l.bf16 %v537_v56 }
  0xa2   : > { %v329_v61 = vsel %vm328_vm6, %v326_v59, %v538_v58  ;;  %v330_v62 = vsel %vm328_vm6, %v327_v60, %v539_v57 }
  0xa3   : > { %v331_v63 = vpack.c.bf16 %v330_v62, %v329_v61 }
  0xa5   : > { %469 = vmatmul.msk.bf16.vlgmr.msra.gmra.mxu0 %vm348_vm7, %v331_v63 }
 0x122   : > { %v361_v2 = vpop.f32.mrf.mxu0 }
 0x123   : > { %v370_v3 = vmul.f32 %v540_v0, %v361_v2 }
 0x125   : > { %v376_v4 = vadd.f32 %v541_v1, %v370_v3 }
 0x127   : > { %v378_v5 = vmax.f32 %v376_v4, 0.0 }
 0x129   : > { %380 = vst.msk [vmem:[%s214_s16] sm:$0xff] %vm313_vm1, %v378_v5 }
 0x12a   : > { %v363_v6 = vpop.f32.mrf.mxu0 }
 0x12b   : > { %v371_v7 = vmul.f32 %v540_v0, %v363_v6 }
 0x12d   : > { %v377_v8 = vadd.f32 %v541_v1, %v371_v7 }
 0x12f   : > { %v379_v9 = vmax.f32 %v377_v8, 0.0 }
 0x131   : > { %382 = vst.msk [vmem:[%s214_s16 + $0x8] sm:$0x1] %vm381_vm8, %v379_v9 }
 0x132 PF: > { %s15_s15 = sadd.s32 1, %s582_s15  }
 0x133   : > { %p12_p7 = scmp.ge.s32.totalorder %s15_s15, 4  }
 0x135   :  { %14 = sbr.rel (!%p12_p7) target bundleno = 1 (0x1), region = 86 }
 0x13a   :  { %404 = vsyncpa [#allocation4], 1 }
 0x13b   :  { %406 = vsyncpa [#allocation4 + $0x1], 1 }

</bundles_post_ra>
